<compile_context>
chip_gen: v7x
topology: tpu7x:2x2x1
jax: 0.10.0
libtpu: 0.0.40
codegen_flags: <defaults>
</compile_context>

<pallas_src>
import functools

import jax
import jax.numpy as jnp
from jax.experimental import pallas as pl
from jax.experimental.pallas import tpu as pltpu

FEATURE_SIZE = 288
ACTION_DIM = 4
IN_FEATURES = FEATURE_SIZE + ACTION_DIM  # 292


def _round_up(x, m):
    return ((x + m - 1) // m) * m


def _fwd_kernel(act_ref, phi_ref, wphi_ref, wab_ref, o_ref):
    """One batch tile:  o = phi @ W_phi_t + (W_act_t + bias)[action].

    act_ref : (TM, 1)  int32    action id per row (each in [0, ACTION_DIM))
    phi_ref : (TM, F)  compute dtype
    wphi_ref: (F,  F)  compute dtype   (in, out) layout -> plain x @ W
    wab_ref : (A,  F)  float32         row a = W_act[:, a] + bias
    o_ref   : (TM, F)  float32
    """
    acc = jnp.dot(phi_ref[...], wphi_ref[...], preferred_element_type=jnp.float32)
    a = act_ref[...]  # (TM, 1) int32
    # Exactly one mask is 1 per row, so this adds w_act_t[action] + bias.
    # Unrolled 4-way select: cheap VPU work, hidden under the MXU/DMA.
    for k in range(ACTION_DIM):
        mask = (a == k).astype(jnp.float32)          # (TM, 1)
        acc = acc + mask * wab_ref[k:k + 1, :]       # broadcast against (1, F)
    o_ref[...] = acc.astype(o_ref.dtype)


def prepare_params(weight, bias):
    """Split/transpose the torch-layout Linear weight ONCE, outside the hot path.

    weight: (FEATURE_SIZE, IN_FEATURES) torch (out, in) layout; input columns
            are [one_hot(action) | phi].
    Returns (w_phi_t (F,F) in->out layout, w_act_b (A,F) with bias folded in).
    """
    weight = jnp.asarray(weight, dtype=jnp.float32)
    bias = jnp.asarray(bias, dtype=jnp.float32)
    w_act_b = weight[:, :ACTION_DIM].T + bias[None, :]   # (4, 288), bias folded
    w_phi_t = weight[:, ACTION_DIM:].T                   # (288, 288)
    return w_phi_t, w_act_b


@functools.partial(jax.jit, static_argnames=("compute_dtype", "block_m"))
def forward_model_pallas(phi_curr, action, w_phi_t, w_act_b,
                         *, compute_dtype=jnp.float32, block_m=1024):
    """phi_curr: (B, 288), action: (B,) int, params from prepare_params()."""
    B = phi_curr.shape[0]
    F = FEATURE_SIZE
    A = ACTION_DIM

    # Batch tile: multiple of 8, capped so f32 tiles (x2 double-buffering)
    # stay well inside scoped VMEM even on v7x (64 MiB physical).
    tm = min(block_m, _round_up(B, 8))
    bp = _round_up(B, tm)

    phi = phi_curr.astype(compute_dtype)
    act = action.astype(jnp.int32).reshape(B, 1)
    if bp != B:
        phi = jnp.pad(phi, ((0, bp - B), (0, 0)))
        act = jnp.pad(act, ((0, bp - B), (0, 0)))   # padded action=0: valid, sliced away

    wphi = w_phi_t.astype(compute_dtype)
    wab = w_act_b.astype(jnp.float32)               # tiny, keep f32

    itemsize = jnp.dtype(compute_dtype).itemsize
    cost = pl.CostEstimate(
        flops=2 * bp * F * F + 3 * bp * A * F,
        transcendentals=0,
        bytes_accessed=(bp * F * itemsize        # phi
                        + bp * 4                 # action ids
                        + F * F * itemsize       # w_phi_t (VMEM-resident)
                        + A * F * 4              # w_act_b
                        + bp * F * 4),           # output (f32)
    )

    out = pl.pallas_call(
        _fwd_kernel,
        out_shape=jax.ShapeDtypeStruct((bp, F), jnp.float32),
        grid_spec=pltpu.PrefetchScalarGridSpec(
            num_scalar_prefetch=0,
            grid=(bp // tm,),
            in_specs=[
                pl.BlockSpec((tm, 1), lambda i: (i, 0)),   # action ids
                pl.BlockSpec((tm, F), lambda i: (i, 0)),   # phi tile
                pl.BlockSpec((F, F), lambda i: (0, 0)),    # w_phi_t, VMEM-resident
                pl.BlockSpec((A, F), lambda i: (0, 0)),    # w_act_b, VMEM-resident
            ],
            out_specs=pl.BlockSpec((tm, F), lambda i: (i, 0)),
        ),
        compiler_params=pltpu.CompilerParams(
            dimension_semantics=("parallel",),             # batch tiles are independent
        ),
        cost_estimate=cost,
    )(act, phi, wphi, wab)

    return out[:B]


def _init_params(key):
    # nn.Linear default init: U(-1/sqrt(fan_in), 1/sqrt(fan_in)).
    k_w, k_b = jax.random.split(key)
    bound = 1.0 / jnp.sqrt(jnp.float32(IN_FEATURES))
    weight = jax.random.uniform(
        k_w, (FEATURE_SIZE, IN_FEATURES), jnp.float32, minval=-bound, maxval=bound
    )
    bias = jax.random.uniform(
        k_b, (FEATURE_SIZE,), jnp.float32, minval=-bound, maxval=bound
    )
    return weight, bias


if __name__ == "__main__":
    key = jax.random.PRNGKey(0)
    k_param, k_phi, k_act = jax.random.split(key, 3)

    B = 8
    weight, bias = _init_params(k_param)
    phi_curr = jax.random.normal(k_phi, (B, FEATURE_SIZE), dtype=jnp.float32)
    action = jax.random.randint(k_act, (B,), 0, ACTION_DIM, dtype=jnp.int32)

    # One-time param prep (split + transpose + bias fold, outside the hot path).
    w_phi_t, w_act_b = prepare_params(weight, bias)

    # f32 path.
    out = forward_model_pallas(phi_curr, action, w_phi_t, w_act_b)
    out = jax.block_until_ready(out)

    # Reference (same math as the torch module).
    one_hot = jax.nn.one_hot(action, ACTION_DIM, dtype=jnp.float32)
    x_ref = jnp.concatenate([one_hot, phi_curr], axis=1)
    ref = x_ref @ weight.T + bias
    assert out.shape == (B, FEATURE_SIZE)
    assert jnp.allclose(out, ref, atol=1e-4, rtol=1e-4)

    # bf16 compute path (recommended on v6e/v7x): half the HBM bytes for
    # phi / w_phi_t, f32 MXU accumulation keeps the error tiny.
    out_bf16 = jax.block_until_ready(
        forward_model_pallas(phi_curr, action, w_phi_t, w_act_b,
                             compute_dtype=jnp.bfloat16)
    )
    assert jnp.allclose(out_bf16, ref, atol=1e-1, rtol=1e-1)

    print("KERNEL_OK")
</pallas_src>

<mosaic_0001>
module attributes {stable_mosaic.version = 11 : i64} {
  func.func @_fwd_kernel(%arg0: i32, %arg1: memref<8x1xi32, #tpu.memory_space<vmem>>, %arg2: memref<8x288xf32, #tpu.memory_space<vmem>>, %arg3: memref<288x288xf32, #tpu.memory_space<vmem>>, %arg4: memref<4x288xf32, #tpu.memory_space<vmem>>, %arg5: memref<8x288xf32, #tpu.memory_space<vmem>>) attributes {dimension_semantics = [#tpu.dimension_semantics<parallel>], iteration_bounds = array<i64: 1>, scalar_prefetch = 0 : i64, scratch_operands = 0 : i64, tpu.core_type = #tpu.core_type<tc>, window_params = [{transform_indices = @transform_0, window_bounds = array<i64: 8, 1>}, {transform_indices = @transform_1, window_bounds = array<i64: 8, 288>}, {pipeline_mode = #tpu.pipeline_mode<synchronous>, transform_indices = @transform_2, window_bounds = array<i64: 288, 288>}, {pipeline_mode = #tpu.pipeline_mode<synchronous>, transform_indices = @transform_3, window_bounds = array<i64: 4, 288>}, {transform_indices = @transform_4, window_bounds = array<i64: 8, 288>}]} {
    %c0 = arith.constant 0 : index
    %c0_0 = arith.constant 0 : index
    %0 = vector.load %arg2[%c0, %c0_0] : memref<8x288xf32, #tpu.memory_space<vmem>>, vector<8x288xf32>
    %c0_1 = arith.constant 0 : index
    %c0_2 = arith.constant 0 : index
    %1 = vector.load %arg3[%c0_1, %c0_2] : memref<288x288xf32, #tpu.memory_space<vmem>>, vector<288x288xf32>
    %cst = arith.constant dense<0.000000e+00> : vector<8x288xf32>
    %2 = tpu.matmul %0, %1, %cst {dimension_numbers = #tpu.dot_dimension_numbers<[1], [0], [0], [1], [0, 0, 1, 1], [], []>} : vector<8x288xf32>, vector<288x288xf32>, vector<8x288xf32> -> vector<8x288xf32>
    %c0_3 = arith.constant 0 : index
    %c0_4 = arith.constant 0 : index
    %3 = vector.load %arg1[%c0_3, %c0_4] : memref<8x1xi32, #tpu.memory_space<vmem>>, vector<8x1xi32>
    %c0_i32 = arith.constant 0 : i32
    %4 = vector.broadcast %c0_i32 : i32 to vector<8x1xi32>
    %5 = arith.cmpi eq, %3, %4 : vector<8x1xi32>
    %6 = arith.extui %5 : vector<8x1xi1> to vector<8x1xi32>
    %7 = arith.sitofp %6 : vector<8x1xi32> to vector<8x1xf32>
    %c0_5 = arith.constant 0 : index
    %c0_6 = arith.constant 0 : index
    %8 = vector.load %arg4[%c0_5, %c0_6] : memref<4x288xf32, #tpu.memory_space<vmem>>, vector<1x288xf32>
    %9 = vector.broadcast %7 : vector<8x1xf32> to vector<8x288xf32>
    %10 = vector.broadcast %8 : vector<1x288xf32> to vector<8x288xf32>
    %11 = arith.mulf %9, %10 : vector<8x288xf32>
    %12 = arith.addf %2, %11 : vector<8x288xf32>
    %c1_i32 = arith.constant 1 : i32
    %13 = vector.broadcast %c1_i32 : i32 to vector<8x1xi32>
    %14 = arith.cmpi eq, %3, %13 : vector<8x1xi32>
    %15 = arith.extui %14 : vector<8x1xi1> to vector<8x1xi32>
    %16 = arith.sitofp %15 : vector<8x1xi32> to vector<8x1xf32>
    %c1 = arith.constant 1 : index
    %c0_7 = arith.constant 0 : index
    %17 = vector.load %arg4[%c1, %c0_7] : memref<4x288xf32, #tpu.memory_space<vmem>>, vector<1x288xf32>
    %18 = vector.broadcast %16 : vector<8x1xf32> to vector<8x288xf32>
    %19 = vector.broadcast %17 : vector<1x288xf32> to vector<8x288xf32>
    %20 = arith.mulf %18, %19 : vector<8x288xf32>
    %21 = arith.addf %12, %20 : vector<8x288xf32>
    %c2_i32 = arith.constant 2 : i32
    %22 = vector.broadcast %c2_i32 : i32 to vector<8x1xi32>
    %23 = arith.cmpi eq, %3, %22 : vector<8x1xi32>
    %24 = arith.extui %23 : vector<8x1xi1> to vector<8x1xi32>
    %25 = arith.sitofp %24 : vector<8x1xi32> to vector<8x1xf32>
    %c2 = arith.constant 2 : index
    %c0_8 = arith.constant 0 : index
    %26 = vector.load %arg4[%c2, %c0_8] : memref<4x288xf32, #tpu.memory_space<vmem>>, vector<1x288xf32>
    %27 = vector.broadcast %25 : vector<8x1xf32> to vector<8x288xf32>
    %28 = vector.broadcast %26 : vector<1x288xf32> to vector<8x288xf32>
    %29 = arith.mulf %27, %28 : vector<8x288xf32>
    %30 = arith.addf %21, %29 : vector<8x288xf32>
    %c3_i32 = arith.constant 3 : i32
    %31 = vector.broadcast %c3_i32 : i32 to vector<8x1xi32>
    %32 = arith.cmpi eq, %3, %31 : vector<8x1xi32>
    %33 = arith.extui %32 : vector<8x1xi1> to vector<8x1xi32>
    %34 = arith.sitofp %33 : vector<8x1xi32> to vector<8x1xf32>
    %c3 = arith.constant 3 : index
    %c0_9 = arith.constant 0 : index
    %35 = vector.load %arg4[%c3, %c0_9] : memref<4x288xf32, #tpu.memory_space<vmem>>, vector<1x288xf32>
    %36 = vector.broadcast %34 : vector<8x1xf32> to vector<8x288xf32>
    %37 = vector.broadcast %35 : vector<1x288xf32> to vector<8x288xf32>
    %38 = arith.mulf %36, %37 : vector<8x288xf32>
    %39 = arith.addf %30, %38 : vector<8x288xf32>
    %c0_10 = arith.constant 0 : index
    %c0_11 = arith.constant 0 : index
    %40 = vector.load %arg5[%c0_10, %c0_11] : memref<8x288xf32, #tpu.memory_space<vmem>>, vector<8x288xf32>
    tpu.vector_store %arg5[%c0_10, %c0_11], %39 {strides = array<i32>} : memref<8x288xf32, #tpu.memory_space<vmem>>, vector<8x288xf32>,
    return
  }
  func.func @transform_0(%arg0: i32) -> (i32, i32) {
    %c0_i32 = arith.constant 0 : i32
    %c0_i32_0 = arith.constant 0 : i32
    return %arg0, %c0_i32 : i32, i32
  }
  func.func @transform_1(%arg0: i32) -> (i32, i32) {
    %c0_i32 = arith.constant 0 : i32
    %c0_i32_0 = arith.constant 0 : i32
    return %arg0, %c0_i32 : i32, i32
  }
  func.func @transform_2(%arg0: i32) -> (i32, i32) {
    %c0_i32 = arith.constant 0 : i32
    %c0_i32_0 = arith.constant 0 : i32
    %c0_i32_1 = arith.constant 0 : i32
    return %c0_i32, %c0_i32_0 : i32, i32
  }
  func.func @transform_3(%arg0: i32) -> (i32, i32) {
    %c0_i32 = arith.constant 0 : i32
    %c0_i32_0 = arith.constant 0 : i32
    %c0_i32_1 = arith.constant 0 : i32
    return %c0_i32, %c0_i32_0 : i32, i32
  }
  func.func @transform_4(%arg0: i32) -> (i32, i32) {
    %c0_i32 = arith.constant 0 : i32
    %c0_i32_0 = arith.constant 0 : i32
    return %arg0, %c0_i32 : i32, i32
  }
}

</mosaic_0001>

<bundles_post_ra>
// kernel: forward_model_pallas.1
= control target key start
LH: loop header
LB: loop body
LE: loop exit
PB: predicated region body
PF: predicated region fallthrough
CT: control target
= control target key end

     0   :  { %9 = vsyncpa [#allocation3], 0  ;;  %s948_s0 = inlined_call_operand.vmem [shape: s32[8,1], index: 0, kind: input, shape index: {}]   ;;  %s949_s1 = inlined_call_operand.hbm [shape: f32[8,288], index: 1, kind: input, shape index: {}]   ;;  %s950_s2 = inlined_call_operand.hbm [shape: f32[288,288], index: 2, kind: input, shape index: {}]   ;;  %s951_s3 = inlined_call_operand.vmem [shape: f32[4,288], index: 3, kind: input, shape index: {}]   ;;  %s952_s4 = inlined_call_operand.hbm [shape: f32[8,288], index: 4, kind: output, shape index: {}]  }
   0x1   :  { %10 = vsyncpa [#allocation6], 0 }
   0x2   :  { %11 = vsyncpa [#allocation4], 0  ;;  %s842_s15 = smov [#allocation2]   ;;  %s843_s17 = smov [#allocation5]  }
   0x3   :  { %s20_s16 = sshll.u32 %s842_s15, 4  ;;  %s29_s18 = sshll.u32 %s843_s17, 4  ;;  %s21_s16 = int_to_ptr.vmem [resolvable:$true] %s20_s16  ;;  %s876_s18 = int_to_ptr.vmem [resolvable:$true] %s29_s18 }
   0x4   :  { %s770_s21 = scalar_lea.hbm %s949_s1, 384 }
   0x5   :  { %p771_p0 = scmp.ne.s32.totalorder %s949_s1, %s770_s21  ;;  %p774_p1 = scmp.lt.u32.totalorder %s770_s21, %s949_s1 }
   0x7   :  { %p776_p2 = pnand %p774_p1, %p771_p0 }
   0x9   :  { %779 = shalt.err (!%p776_p2)
}
   0xa   :  { %s780_s26 = scalar_lea.vmem %s21_s16, 384  ;;  %p785_p4 = scmp.lt.s32.totalorder %s21_s16, %s21_s16 }
   0xb   :  { %p781_p3 = scmp.ne.s32.totalorder %s21_s16, %s780_s26  ;;  %p786_p5 = scmp.lt.s32.totalorder %s780_s26, %s780_s26 }
   0xd   :  { %p787_p6 = por %p786_p5, %p785_p4 }
   0xf   :  { %p788_p7 = pnand %p787_p6, %p781_p3 }
  0x11   :  { %791 = shalt.err (!%p788_p7)
}
  0x12   :  { %23 = dma.hbm_to_vmem [thread:$0]  %s949_s1, 384, %s21_s16, [#allocation3]  }
  0x13   :  { %s792_s5 = scalar_lea.hbm %s950_s2, 13824 }
  0x14   :  { %p793_p8 = scmp.ne.s32.totalorder %s950_s2, %s792_s5  ;;  %p796_p9 = scmp.lt.u32.totalorder %s792_s5, %s950_s2 }
  0x16   :  { %p798_p10 = pnand %p796_p9, %p793_p8 }
  0x18   :  { %801 = shalt.err (!%p798_p10)
}
  0x19   :  { %s802_s10 = scalar_lea.vmem %s876_s18, 13824  ;;  %p807_p12 = scmp.lt.s32.totalorder %s876_s18, %s876_s18 }
  0x1a   :  { %p803_p11 = scmp.ne.s32.totalorder %s876_s18, %s802_s10  ;;  %p808_p13 = scmp.lt.s32.totalorder %s802_s10, %s802_s10 }
  0x1c   :  { %p809_p0 = por %p808_p13, %p807_p12 }
  0x1e   :  { %p810_p1 = pnand %p809_p0, %p803_p11 }
  0x20   :  { %813 = shalt.err (!%p810_p1)
}
  0x21   :  { %s844_s1 = smov 384   ;;  %s845_s11 = smov 24  }
  0x22   :  { %35 = dma.hbm_to_vmem [thread:$0]  %s950_s2, 13824, %s876_s18, [#allocation6], %s844_s1, %s844_s1, %s845_s11  }
  0x23   :  { %836 = dma.done.wait [#allocation3], 384  }
  0x24   :  { %837 = vsyncadd [#allocation3], 4294966912 }
  0x25   :  { %838 = dma.done.wait [#allocation6], 13824  }
  0x26   :  { %839 = vsyncadd [#allocation6], 4294953472  ;;  %v846_v0 = vmov 0.0   ;;  %v847_v1 = vmov 0   ;;  %v48_v2 = vld [vmem:[#allocation5 + $0x8] sm:$0xff]  ;;  %v51_v3 = vld [vmem:[#allocation5 + $0x20] sm:$0xff] }
  0x27   :  { %323 = vmatprep.mubr.f32.mxu1 %v846_v0  ;;  %768 = vset.pattern.permute.xlu0 %v847_v1  ;;  %v47_v4 = vld [vmem:[#allocation5] sm:$0xff]  ;;  %v645_v5 = vpack.c.bf16 %v51_v3, %v48_v2  ;;  %v50_v6 = vld [vmem:[#allocation5 + $0x18] sm:$0xff]  ;;  %v57_v8 = vld [vmem:[#allocation5 + $0x50] sm:$0xff]  ;;  %vm184_vm0 = vcmask 261120   ;;  %vm849_vm5 = vmmov 0  }
  0x28   :  { %769 = vset.pattern.permute.xlu1 %v847_v1  ;;  %v54_v7 = vld [vmem:[#allocation5 + $0x38] sm:$0xff]  ;;  %v647_v9 = vpack.c.bf16 %v50_v6, %v47_v4  ;;  %v53_v11 = vld [vmem:[#allocation5 + $0x30] sm:$0xff]  ;;  %v56_v12 = vld [vmem:[#allocation5 + $0x48] sm:$0xff] }
  0x29   :  { %v649_v10 = vpack.c.bf16 %v57_v8, %v54_v7  ;;  %v60_v13 = vld [vmem:[#allocation5 + $0x68] sm:$0xff]  ;;  %646 = vmatprep.subr.bf16.mxu0 %v645_v5  ;;  %v63_v14 = vld [vmem:[#allocation5 + $0x80] sm:$0xff]  ;;  %v651_v15 = vpack.c.bf16 %v56_v12, %v53_v11  ;;  %v62_v18 = vld [vmem:[#allocation5 + $0x78] sm:$0xff] }
  0x2a   :  { %648 = vmatpush1.bf16.msra.mxu0 %v647_v9  ;;  %v59_v16 = vld [vmem:[#allocation5 + $0x60] sm:$0xff]  ;;  %v653_v17 = vpack.c.bf16 %v63_v14, %v60_v13  ;;  %v144_v19 = vld [vmem:[#allocation5 + $0x308] sm:$0xff]  ;;  %v66_v21 = vld [vmem:[#allocation5 + $0x98] sm:$0xff] }
  0x2b   :  { %650 = vmatprep.subr.bf16.mxu0 %v649_v10  ;;  %v147_v20 = vld [vmem:[#allocation5 + $0x320] sm:$0xff]  ;;  %v69_v22 = vld [vmem:[#allocation5 + $0xb0] sm:$0xff]  ;;  %v146_v25 = vld [vmem:[#allocation5 + $0x318] sm:$0xff]  ;;  %v655_v26 = vpack.c.bf16 %v62_v18, %v59_v16 }
  0x2c   :  { %v709_v23 = vpack.c.bf16 %v147_v20, %v144_v19  ;;  %v143_v24 = vld [vmem:[#allocation5 + $0x300] sm:$0xff]  ;;  %v65_v27 = vld [vmem:[#allocation5 + $0x90] sm:$0xff]  ;;  %v150_v29 = vld [vmem:[#allocation5 + $0x338] sm:$0xff]  ;;  %v657_v31 = vpack.c.bf16 %v69_v22, %v66_v21 }
  0x2d   :  { %v711_v28 = vpack.c.bf16 %v146_v25, %v143_v24  ;;  %v153_v30 = vld [vmem:[#allocation5 + $0x350] sm:$0xff]  ;;  %v68_v32 = vld [vmem:[#allocation5 + $0xa8] sm:$0xff]  ;;  %v75_v37 = vld [vmem:[#allocation5 + $0xe0] sm:$0xff] }
  0x2e   :  { %652 = vmatpush1.bf16.msra.mxu0 %v651_v15  ;;  %710 = vmatprep.subr.bf16.mxu1 %v709_v23  ;;  %v713_v33 = vpack.c.bf16 %v153_v30, %v150_v29  ;;  %v149_v34 = vld [vmem:[#allocation5 + $0x330] sm:$0xff]  ;;  %v152_v35 = vld [vmem:[#allocation5 + $0x348] sm:$0xff]  ;;  %v659_v41 = vpack.c.bf16 %v68_v32, %v65_v27  ;;  %v71_v42 = vld [vmem:[#allocation5 + $0xc0] sm:$0xff] }
  0x2f   :  { %654 = vmatprep.subr.bf16.mxu0 %v653_v17  ;;  %v72_v36 = vld [vmem:[#allocation5 + $0xc8] sm:$0xff]  ;;  %712 = vmatpush1.bf16.msra.mxu1 %v711_v28  ;;  %v715_v38 = vpack.c.bf16 %v152_v35, %v149_v34  ;;  %v97_v39 = vld [vmem:[#allocation5 + $0x190] sm:$0xff]  ;;  %v74_v47 = vld [vmem:[#allocation5 + $0xd8] sm:$0xff] }
  0x30   :  { %714 = vmatprep.subr.bf16.mxu1 %v713_v33  ;;  %v100_v40 = vld [vmem:[#allocation5 + $0x1a8] sm:$0xff]  ;;  %v49_v44 = vld [vmem:[#allocation5 + $0x10] sm:$0xff]  ;;  %v661_v46 = vpack.c.bf16 %v75_v37, %v72_v36  ;;  %v78_v48 = vld [vmem:[#allocation5 + $0xf8] sm:$0xff]  ;;  %v663_v57 = vpack.c.bf16 %v74_v47, %v71_v42 }
  0x31   :  { %v717_v43 = vpack.c.bf16 %v100_v40, %v97_v39  ;;  %v52_v45 = vld [vmem:[#allocation5 + $0x28] sm:$0xff]  ;;  %v103_v49 = vld [vmem:[#allocation5 + $0x1c0] sm:$0xff]  ;;  %v81_v50 = vld [vmem:[#allocation5 + $0x110] sm:$0xff] }
  0x32   :  { %656 = vmatpush1.bf16.msra.mxu0 %v655_v26  ;;  %v908_v51 = vld [vmem:[#allocation2 + $0x10] sm:$0xff]  ;;  %v719_v52 = vpack.c.bf16 %v52_v45, %v49_v44  ;;  %v55_v55 = vld [vmem:[#allocation5 + $0x40] sm:$0xff]  ;;  %v109_v58 = vld [vmem:[#allocation5 + $0x1f0] sm:$0xff]  ;;  %v665_v60 = vpack.c.bf16 %v81_v50, %v78_v48 }
  0x33   :  { %658 = vmatprep.subr.bf16.mxu0 %v657_v31  ;;  %716 = vmatpush1.bf16.msra.mxu1 %v715_v38  ;;  %v106_v53 = vld [vmem:[#allocation5 + $0x1d8] sm:$0xff]  ;;  %v112_v59 = vld [vmem:[#allocation5 + $0x208] sm:$0xff]  ;;  %v77_v61 = vld [vmem:[#allocation5 + $0xf0] sm:$0xff] }
  0x34   :  { %718 = vmatprep.subr.bf16.mxu1 %v717_v43  ;;  %v721_v54 = vpack.c.bf16 %v106_v53, %v103_v49  ;;  %v58_v56 = vld [vmem:[#allocation5 + $0x58] sm:$0xff]  ;;  %v80_v62 = vld [vmem:[#allocation5 + $0x108] sm:$0xff]  ;;  %v87_v1 = vld [vmem:[#allocation5 + $0x140] sm:$0xff]  ;;  %v725_v3 = vpack.c.bf16 %v112_v59, %v109_v58 }
  0x35   :  { %v84_v63 = vld [vmem:[#allocation5 + $0x128] sm:$0xff]  ;;  %v723_v2 = vpack.c.bf16 %v58_v56, %v55_v55  ;;  %v61_v4 = vld [vmem:[#allocation5 + $0x70] sm:$0xff]  ;;  %v667_v6 = vpack.c.bf16 %v80_v62, %v77_v61  ;;  %v115_v7 = vld [vmem:[#allocation5 + $0x220] sm:$0xff] }
  0x36   :  { %660 = vmatpush1.bf16.msra.mxu0 %v659_v41  ;;  %586 = vmatmul.mubr.msk.f32.vlgmr.msra.gmra.mrb[0].mxu1 %vm184_vm0, %v908_v51  ;;  %v64_v5 = vld [vmem:[#allocation5 + $0x88] sm:$0xff]  ;;  %v118_v8 = vld [vmem:[#allocation5 + $0x238] sm:$0xff]  ;;  %v669_v9 = vpack.c.bf16 %v87_v1, %v84_v63  ;;  %v83_v10 = vld [vmem:[#allocation5 + $0x120] sm:$0xff] }
  0x37   :  { %662 = vmatprep.subr.bf16.mxu0 %v661_v46  ;;  %720 = vmatpush3.bf16.msra.mxu1 %v719_v52  ;;  %v86_v11 = vld [vmem:[#allocation5 + $0x138] sm:$0xff]  ;;  %v93_v13 = vld [vmem:[#allocation5 + $0x170] sm:$0xff]  ;;  %v727_v14 = vpack.c.bf16 %v64_v5, %v61_v4  ;;  %v729_v15 = vpack.c.bf16 %v118_v8, %v115_v7  ;;  %v67_v16 = vld [vmem:[#allocation5 + $0xa0] sm:$0xff] }
  0x38   :  { %722 = vmatprep.subr.bf16.mxu1 %v721_v54  ;;  %v90_v12 = vld [vmem:[#allocation5 + $0x158] sm:$0xff]  ;;  %v671_v18 = vpack.c.bf16 %v86_v11, %v83_v10  ;;  %v121_v19 = vld [vmem:[#allocation5 + $0x250] sm:$0xff]  ;;  %v124_v20 = vld [vmem:[#allocation5 + $0x268] sm:$0xff] }
  0x39   :  { %v70_v17 = vld [vmem:[#allocation5 + $0xb8] sm:$0xff]  ;;  %v673_v21 = vpack.c.bf16 %v93_v13, %v90_v12  ;;  %v89_v22 = vld [vmem:[#allocation5 + $0x150] sm:$0xff]  ;;  %v92_v23 = vld [vmem:[#allocation5 + $0x168] sm:$0xff]  ;;  %v733_v27 = vpack.c.bf16 %v124_v20, %v121_v19 }
  0x3a   :  { %664 = vmatpush1.bf16.msra.mxu0 %v663_v57  ;;  %v96_v24 = vld [vmem:[#allocation5 + $0x188] sm:$0xff]  ;;  %v99_v25 = vld [vmem:[#allocation5 + $0x1a0] sm:$0xff]  ;;  %v731_v26 = vpack.c.bf16 %v70_v17, %v67_v16  ;;  %v73_v28 = vld [vmem:[#allocation5 + $0xd0] sm:$0xff]  ;;  %v675_v30 = vpack.c.bf16 %v92_v23, %v89_v22 }
  0x3b   :  { %666 = vmatprep.subr.bf16.mxu0 %v665_v60  ;;  %724 = vmatpush3.bf16.msra.mxu1 %v723_v2  ;;  %v76_v29 = vld [vmem:[#allocation5 + $0xe8] sm:$0xff]  ;;  %v127_v31 = vld [vmem:[#allocation5 + $0x280] sm:$0xff]  ;;  %v130_v32 = vld [vmem:[#allocation5 + $0x298] sm:$0xff]  ;;  %v677_v33 = vpack.c.bf16 %v99_v25, %v96_v24 }
  0x3c   :  { %726 = vmatprep.subr.bf16.mxu1 %v725_v3  ;;  %v95_v34 = vld [vmem:[#allocation5 + $0x180] sm:$0xff]  ;;  %v98_v35 = vld [vmem:[#allocation5 + $0x198] sm:$0xff]  ;;  %v105_v37 = vld [vmem:[#allocation5 + $0x1d0] sm:$0xff]  ;;  %v735_v38 = vpack.c.bf16 %v76_v29, %v73_v28  ;;  %v737_v39 = vpack.c.bf16 %v130_v32, %v127_v31 }
  0x3d   :  { %v102_v36 = vld [vmem:[#allocation5 + $0x1b8] sm:$0xff]  ;;  %v79_v40 = vld [vmem:[#allocation5 + $0x100] sm:$0xff]  ;;  %v679_v42 = vpack.c.bf16 %v98_v35, %v95_v34  ;;  %v133_v43 = vld [vmem:[#allocation5 + $0x2b0] sm:$0xff] }
  0x3e   :  { %668 = vmatpush1.bf16.msra.mxu0 %v667_v6  ;;  %v82_v41 = vld [vmem:[#allocation5 + $0x118] sm:$0xff]  ;;  %v136_v44 = vld [vmem:[#allocation5 + $0x2c8] sm:$0xff]  ;;  %v45_v45 = vld [vmem:[#allocation2 + $0x8] sm:$0xff]  ;;  %v681_v46 = vpack.c.bf16 %v105_v37, %v102_v36 }
  0x3f   :  { %670 = vmatprep.subr.bf16.mxu0 %v669_v9  ;;  %728 = vmatpush3.bf16.msra.mxu1 %v727_v14  ;;  %v101_v47 = vld [vmem:[#allocation5 + $0x1b0] sm:$0xff]  ;;  %v104_v48 = vld [vmem:[#allocation5 + $0x1c8] sm:$0xff]  ;;  %v111_v50 = vld [vmem:[#allocation5 + $0x200] sm:$0xff]  ;;  %v739_v52 = vpack.c.bf16 %v82_v41, %v79_v40  ;;  %v741_v53 = vpack.c.bf16 %v136_v44, %v133_v43 }
  0x40   :  { %730 = vmatprep.subr.bf16.mxu1 %v729_v15  ;;  %394 = vmatprep.mubr.f32.mxu1 %v45_v45  ;;  %v108_v49 = vld [vmem:[#allocation5 + $0x1e8] sm:$0xff]  ;;  %v85_v54 = vld [vmem:[#allocation5 + $0x130] sm:$0xff]  ;;  %v683_v56 = vpack.c.bf16 %v104_v48, %v101_v47  ;;  %v139_v57 = vld [vmem:[#allocation5 + $0x2e0] sm:$0xff] }
  0x41   :  { %252 = vmatprep.mubr.f32.mxu0 %v45_v45  ;;  %v88_v55 = vld [vmem:[#allocation5 + $0x148] sm:$0xff]  ;;  %v142_v58 = vld [vmem:[#allocation5 + $0x2f8] sm:$0xff]  ;;  %v685_v59 = vpack.c.bf16 %v111_v50, %v108_v49  ;;  %v107_v60 = vld [vmem:[#allocation5 + $0x1e0] sm:$0xff]  ;;  %v166_v49 = vlaneseq }
  0x42   :  { %672 = vmatpush1.bf16.msra.mxu0 %v671_v18  ;;  %v110_v61 = vld [vmem:[#allocation5 + $0x1f8] sm:$0xff]  ;;  %v155_v62 = vld [vmem:[%s948_s0] sm:$0xff]  ;;  %v117_v1 = vld [vmem:[#allocation5 + $0x230] sm:$0xff]  ;;  %v743_v2 = vpack.c.bf16 %v88_v55, %v85_v54  ;;  %v745_v3 = vpack.c.bf16 %v142_v58, %v139_v57 }
  0x43   :  { %674 = vmatprep.subr.bf16.mxu0 %v673_v21  ;;  %732 = vmatpush3.bf16.msra.mxu1 %v731_v26  ;;  %v114_v63 = vld [vmem:[#allocation5 + $0x218] sm:$0xff]  ;;  %vm156_vm1 = vcmp.eq.s32.totalorder %v155_v62, 0  ;;  %vm502_vm2 = vcmp.eq.s32.totalorder %v155_v62, 2  ;;  %vm470_vm3 = vcmp.eq.s32.totalorder %v155_v62, 1  ;;  %v91_v4 = vld [vmem:[#allocation5 + $0x160] sm:$0xff]  ;;  %vm534_vm4 = vcmp.eq.s32.totalorder %v155_v62, 3 }
  0x44   :  { %734 = vmatprep.subr.bf16.mxu1 %v733_v27  ;;  %v94_v5 = vld [vmem:[#allocation5 + $0x178] sm:$0xff]  ;;  %v585_v6 = vsel %vm156_vm1, 1.0, %v846_v0  ;;  %v590_v7 = vsel %vm502_vm2, 1.0, %v846_v0  ;;  %v687_v8 = vpack.c.bf16 %v110_v61, %v107_v60  ;;  %v689_v9 = vpack.c.bf16 %v117_v1, %v114_v63  ;;  %v113_v10 = vld [vmem:[#allocation5 + $0x210] sm:$0xff]  ;;  %v116_v11 = vld [vmem:[#allocation5 + $0x228] sm:$0xff] }
  0x45   :  { %162 = vperm.xlu0 %768, %v585_v6   ;;  %509 = vperm.xlu1 %769, %v590_v7   ;;  %v588_v12 = vsel %vm470_vm3, 1.0, %v846_v0  ;;  %v120_v13 = vld [vmem:[#allocation5 + $0x248] sm:$0xff]  ;;  %v123_v14 = vld [vmem:[#allocation5 + $0x260] sm:$0xff]  ;;  %v747_v15 = vpack.c.bf16 %v94_v5, %v91_v4  ;;  %v592_v16 = vsel %vm534_vm4, 1.0, %v846_v0  ;;  %v145_v17 = vld [vmem:[#allocation5 + $0x310] sm:$0xff]  ;;  %v691_v19 = vpack.c.bf16 %v116_v11, %v113_v10 }
  0x46   :  { %676 = vmatpush1.bf16.msra.mxu0 %v675_v30  ;;  %v148_v18 = vld [vmem:[#allocation5 + $0x328] sm:$0xff]  ;;  %v693_v20 = vpack.c.bf16 %v123_v14, %v120_v13  ;;  %v119_v21 = vld [vmem:[#allocation5 + $0x240] sm:$0xff]  ;;  %v122_v22 = vld [vmem:[#allocation5 + $0x258] sm:$0xff]  ;;  %v848_v27 = vmov 0.0|0.0   ;;  %v167_v50 = vshrl.u32 %v166_v49, 7 }
  0x47   :  { %678 = vmatprep.subr.bf16.mxu0 %v677_v33  ;;  %736 = vmatpush3.bf16.msra.mxu1 %v735_v38  ;;  %v126_v23 = vld [vmem:[#allocation5 + $0x278] sm:$0xff]  ;;  %v129_v24 = vld [vmem:[#allocation5 + $0x290] sm:$0xff]  ;;  %v44_v25 = vld [vmem:[#allocation2] sm:$0xff]  ;;  %v750_v26 = vpack.c.bf16 %v148_v18, %v145_v17  ;;  %v695_v30 = vpack.c.bf16 %v122_v22, %v119_v21 }
  0x48   :  { %738 = vmatprep.subr.bf16.mxu1 %v737_v39  ;;  %v151_v28 = vld [vmem:[#allocation5 + $0x340] sm:$0xff]  ;;  %v154_v29 = vld [vmem:[#allocation5 + $0x358] sm:$0xff]  ;;  %v697_v31 = vpack.c.bf16 %v129_v24, %v126_v23  ;;  %v125_v32 = vld [vmem:[#allocation5 + $0x270] sm:$0xff]  ;;  %v168_v4 = vsub.s32 0, %v167_v50  ;;  %v172_v7 = vsub.s32 1, %v167_v50 }
  0x49   :  { %477 = vperm.xlu0 %768, %v588_v12   ;;  %541 = vperm.xlu1 %769, %v592_v16   ;;  %v128_v33 = vld [vmem:[#allocation5 + $0x288] sm:$0xff]  ;;  %v135_v35 = vld [vmem:[#allocation5 + $0x2c0] sm:$0xff]  ;;  %v753_v36 = vpack.c.bf16 %v154_v29, %v151_v28  ;;  %v134_v40 = vld [vmem:[#allocation5 + $0x2b8] sm:$0xff] }
  0x4a   :  { %680 = vmatpush1.bf16.msra.mxu0 %v679_v42  ;;  %v132_v34 = vld [vmem:[#allocation5 + $0x2a8] sm:$0xff]  ;;  %v699_v37 = vpack.c.bf16 %v128_v33, %v125_v32  ;;  %v131_v39 = vld [vmem:[#allocation5 + $0x2a0] sm:$0xff]  ;;  %v138_v41 = vld [vmem:[#allocation5 + $0x2d8] sm:$0xff] }
  0x4b   :  { %682 = vmatprep.subr.bf16.mxu0 %v681_v46  ;;  %740 = vmatpush3.bf16.msra.mxu1 %v739_v52  ;;  %v701_v38 = vpack.c.bf16 %v135_v35, %v132_v34  ;;  %v141_v42 = vld [vmem:[#allocation5 + $0x2f0] sm:$0xff]  ;;  %v703_v43 = vpack.c.bf16 %v134_v40, %v131_v39  ;;  %v140_v46 = vld [vmem:[#allocation5 + $0x2e8] sm:$0xff]  ;;  %v176_v52 = vsub.s32 2, %v167_v50 }
  0x4c   :  { %742 = vmatprep.subr.bf16.mxu1 %v741_v53  ;;  %v705_v44 = vpack.c.bf16 %v141_v42, %v138_v41  ;;  %v137_v45 = vld [vmem:[#allocation5 + $0x2d0] sm:$0xff] }
  0x4d   :  { %v159_v53 = vld [vmem:[%s951_s3] ss:$4 sm:$0x7]  ;;  %v591_v60 = vld [vmem:[%s951_s3 + $0x2] ss:$4 sm:$0x7] }
  0x4e   :  { %684 = vmatpush1.bf16.msra.mxu0 %v683_v56  ;;  %v177_v54 = vrot.slane %v159_v53, %v176_v52  ;;  %v593_v1 = vld [vmem:[%s951_s3 + $0x3] ss:$4 sm:$0x7]  ;;  %v169_v14 = vrot.slane %v159_v53, %v168_v4  ;;  %v173_v16 = vrot.slane %v159_v53, %v172_v7  ;;  %v516_v21 = vrot.slane %v591_v60, %v168_v4 }
  0x4f   :  { %686 = vmatprep.subr.bf16.mxu0 %v685_v59  ;;  %744 = vmatpush3.bf16.msra.mxu1 %v743_v2  ;;  %v524_v2 = vrot.slane %v591_v60, %v176_v52  ;;  %v556_v6 = vrot.slane %v593_v1, %v176_v52  ;;  %v548_v32 = vrot.slane %v593_v1, %v168_v4 }
  0x50   :  { %746 = vmatprep.subr.bf16.mxu1 %v745_v3  ;;  %v552_v35 = vrot.slane %v593_v1, %v172_v7 }
  0x52   :  { %688 = vmatpush1.bf16.msra.mxu0 %v687_v8 }
  0x53   :  { %690 = vmatprep.subr.bf16.mxu0 %v689_v9  ;;  %748 = vmatpush3.bf16.msra.mxu1 %v747_v15 }
  0x54   :  { %749 = vmatprep.subr.bf16.mxu1 %v848_v27 }
  0x56   :  { %692 = vmatpush1.bf16.msra.mxu0 %v691_v19  ;;  %395 = vmatmul.mubr.f32.vlgmr.msra.gmra.mrb[2].mxu1 %v44_v25 }
  0x57   :  { %694 = vmatprep.subr.bf16.mxu0 %v693_v20  ;;  %751 = vmatpush3.bf16.msra.mxu1 %v750_v26 }
  0x58   :  { %642 = vmatprep.mubr.msk.f32.mxu1 %vm849_vm5, %v846_v0  ;;  %752 = vmatprep.subr.bf16.mxu1 %v848_v27  ;;  %v707_v0 = vpack.c.bf16 %v140_v46, %v137_v45  ;;  %v520_v27 = vrot.slane %v591_v60, %v172_v7 }
  0x5a   :  { %696 = vmatpush1.bf16.msra.mxu0 %v695_v30 }
  0x5b   :  { %698 = vmatprep.subr.bf16.mxu0 %v697_v31  ;;  %754 = vmatpush3.bf16.msra.mxu1 %v753_v36 }
  0x5e   :  { %700 = vmatpush1.bf16.msra.mxu0 %v699_v37  ;;  %643 = vmatmul.mubr.msk.f32.vlgmr.msra.gmra.mrb[4].mxu1 %vm184_vm0, %v908_v51  ;;  %v589_v51 = vld [vmem:[%s951_s3 + $0x1] ss:$4 sm:$0x7]  ;;  %s850_s3 = smov [#allocation7]  }
  0x5f   :  { %702 = vmatprep.subr.bf16.mxu0 %v701_v38  ;;  %v492_v62 = vrot.slane %v589_v51, %v176_v52  ;;  %v484_v22 = vrot.slane %v589_v51, %v168_v4  ;;  %v488_v23 = vrot.slane %v589_v51, %v172_v7  ;;  %s575_s22 = sshll.u32 %s850_s3, 4  ;;  %s576_s22 = int_to_ptr.vmem [resolvable:$true] %s575_s22 }
  0x60   :  { %s814_s23 = scalar_lea.vmem %s576_s22, 384  ;;  %p819_p3 = scmp.lt.s32.totalorder %s576_s22, %s576_s22 }
  0x61   :  { %p815_p2 = scmp.ne.s32.totalorder %s576_s22, %s814_s23  ;;  %p820_p4 = scmp.lt.s32.totalorder %s814_s23, %s814_s23 }
  0x62   :  { %704 = vmatpush1.bf16.msra.mxu0 %v703_v43 }
  0x63   :  { %706 = vmatprep.subr.bf16.mxu0 %v705_v44  ;;  %p821_p5 = por %p820_p4, %p819_p3 }
  0x65   :  { %p822_p6 = pnand %p821_p5, %p815_p2 }
  0x66   :  { %708 = vmatpush1.bf16.msra.mxu0 %v707_v0 }
  0x69   :  { %253 = vmatmul.mubr.f32.vlgmr.msra.gmra.mrb[0].mxu0 %v44_v25 }
  0xc4   :  { %v163_v55 = vpop.permute.xlu0 %162  ;;  %v510_v61 = vpop.permute.xlu1 %509 }
  0xc5   :  { %v183_v57 = vmul.f32 %v177_v54, %v163_v55  ;;  %v530_v10 = vmul.f32 %v524_v2, %v510_v61  ;;  %v181_v18 = vmul.f32 %v169_v14, %v163_v55  ;;  %v182_v20 = vmul.f32 %v173_v16, %v163_v55 }
  0xc6   :  { %v528_v29 = vmul.f32 %v516_v21, %v510_v61  ;;  %v529_v37 = vmul.f32 %v520_v27, %v510_v61 }
  0xc8   :  { %v478_v63 = vpop.permute.xlu0 %477  ;;  %v542_v9 = vpop.permute.xlu1 %541 }
  0xc9   :  { %v498_v5 = vmul.f32 %v492_v62, %v478_v63  ;;  %v562_v15 = vmul.f32 %v556_v6, %v542_v9  ;;  %v496_v30 = vmul.f32 %v484_v22, %v478_v63  ;;  %v497_v33 = vmul.f32 %v488_v23, %v478_v63 }
  0xca   :  { %v560_v40 = vmul.f32 %v548_v32, %v542_v9  ;;  %v561_v42 = vmul.f32 %v552_v35, %v542_v9 }
 0x109   :  { %v325_v47 = vpop.f32.mrb[0].mxu1 }
 0x10a   :  { %v327_v48 = vpop.f32.mrb[1].mxu1 }
 0x129   :  { %v626_v56 = vpop.f32.mrb[2].mxu1 }
 0x12a   :  { %v627_v58 = vpop.f32.mrb[3].mxu1 }
 0x12b   :  { %v628_v59 = vadd.f32 %v627_v58, %v626_v56 }
 0x12d   :  { %v397_v3 = vadd.f32 %v628_v59, %v183_v57 }
 0x131   :  { %v466_v8 = vpop.f32.mrb[4].mxu1 }
 0x132   :  { %v467_v11 = vadd.f32 %v466_v8, %v397_v3  ;;  %v644_v12 = vpop.f32.mrb[5].mxu1 }
 0x134   :  { %v501_v13 = vadd.f32 %v498_v5, %v467_v11 }
 0x136   :  { %v533_v17 = vadd.f32 %v530_v10, %v501_v13 }
 0x138   :  { %v565_v19 = vadd.f32 %v562_v15, %v533_v17 }
 0x13a   :  { %568 = vst.msk [vmem:[#allocation7 + $0x10] sm:$0xff] %vm184_vm0, %v565_v19 }
 0x13c   :  { %v254_v24 = vpop.f32.mrb[0].mxu0 }
 0x13d   :  { %v255_v25 = vadd.f32 %v254_v24, %v181_v18  ;;  %v256_v26 = vpop.f32.mrb[1].mxu0 }
 0x13e   :  { %v257_v28 = vadd.f32 %v256_v26, %v182_v20 }
 0x13f   :  { %v326_v31 = vadd.f32 %v325_v47, %v255_v25 }
 0x140   :  { %v328_v34 = vadd.f32 %v327_v48, %v257_v28 }
 0x141   :  { %v499_v36 = vadd.f32 %v496_v30, %v326_v31 }
 0x142   :  { %v500_v38 = vadd.f32 %v497_v33, %v328_v34 }
 0x143   :  { %v531_v39 = vadd.f32 %v528_v29, %v499_v36 }
 0x144   :  { %v532_v41 = vadd.f32 %v529_v37, %v500_v38 }
 0x145   :  { %v563_v43 = vadd.f32 %v560_v40, %v531_v39 }
 0x146   :  { %v564_v44 = vadd.f32 %v561_v42, %v532_v41 }
 0x147   :  { %566 = vst [vmem:[#allocation7] sm:$0xff] %v563_v43 }
 0x148   :  { %567 = vst [vmem:[#allocation7 + $0x8] sm:$0xff] %v564_v44 }
 0x149   :  { %825 = shalt.err (!%p822_p6)
}
 0x14a   :  { %s826_s26 = scalar_lea.hbm %s952_s4, 384 }
 0x14b   :  { %p827_p7 = scmp.ne.s32.totalorder %s952_s4, %s826_s26  ;;  %p830_p8 = scmp.lt.u32.totalorder %s826_s26, %s952_s4 }
 0x14d   :  { %p832_p9 = pnand %p830_p8, %p827_p7 }
 0x14f   :  { %835 = shalt.err (!%p832_p9)
}
 0x150   :  { %578 = dma.vmem_to_hbm [thread:$0]  %s576_s22, 384, %s952_s4, [#allocation4]  }
 0x151   :  { %840 = dma.done.wait [#allocation4], 384  }
 0x152   :  { %841 = vsyncadd [#allocation4], 4294966912 }
 0x153   :  { %582 = vsyncpa [#allocation3], 1 }
 0x154   :  { %583 = vsyncpa [#allocation6], 1 }
 0x155   :  { %584 = vsyncpa [#allocation4], 1 }

</bundles_post_ra>
